<compile_context>
chip_gen: v5e
topology: v5e:2x2
jax: 0.10.0
libtpu: 0.0.40
codegen_flags: <defaults>
</compile_context>

<pallas_src>
import functools

import jax
import jax.numpy as jnp
from jax.experimental import pallas as pl
from jax.experimental.pallas import tpu as pltpu


def _head_kernel(vis_ref, txt_ref, cxmi_ref, lbl_ref,
                 w1t_ref, b1_ref, wlt_ref, bl_ref,
                 w2a_ref, w2b_ref, b2_ref, out_ref):
    BT, R, D = vis_ref.shape

    # ---- CXMI-weighted pooling over packed (visual ++ textual) features.
    #   packed = cat([vis, txt], 1); w = cat([CXMI, CXMI], 1) / sum(...)
    #   pooled = packed^T @ w == sum_r CXMI_r * (vis_r + txt_r) / (2 * sum_r CXMI_r)
    cxmi = cxmi_ref[...].astype(jnp.float32)                      # (BT, R)
    inv = 0.5 / jnp.sum(cxmi, axis=1, keepdims=True)              # exact divide, (BT, 1)
    # NOTE: padded rows of a partial last batch tile may have sum == 0 -> Inf;
    # those rows are discarded on writeback, so the stored output is correct.

    vis = vis_ref[...]                                            # (BT, R, D) bf16/f32
    txt = txt_ref[...]
    acc = jnp.zeros((BT, D), jnp.float32)
    # Statically unrolled accumulation over r keeps the f32 live set at (BT, D)
    # instead of materializing a (BT, R, D) f32 temp (VMEM headroom -> larger BT).
    for r in range(R):
        vr = vis[:, r, :].astype(jnp.float32)                     # (BT, D)
        tr = txt[:, r, :].astype(jnp.float32)
        acc = acc + cxmi[:, r:r + 1] * (vr + tr)
    pooled = acc * inv                                            # (BT, D) f32

    # ---- predict_linear_1 + ReLU  (MXU, bf16 operands, f32 accumulate)
    w1t = w1t_ref[...]                                            # (D, D) bf16
    h = jnp.dot(pooled.astype(w1t.dtype), w1t,
                preferred_element_type=jnp.float32) + b1_ref[...]
    h = jnp.maximum(h, 0.0)                                       # (BT, D)

    # ---- label_embedding_linear: contraction K = R (tiny) on the VPU instead
    #      of a degenerate MXU matmul (overlaps with the streaming pooling work).
    lbl = lbl_ref[...].astype(jnp.float32)                        # (BT, R)
    wlt = wlt_ref[...]                                            # (R, D) f32
    lab = jnp.zeros((BT, D), jnp.float32)
    for r in range(R):
        lab = lab + lbl[:, r:r + 1] * wlt[r:r + 1, :]
    label = lab + bl_ref[...]                                     # (BT, D)

    # ---- predict_linear_2 on cat([h, label], dim=1): weight split into two
    #      (1, D) rows; VPU mul + lane reduce (N=1 MXU matmul would waste the MXU).
    out = (jnp.sum(h * w2a_ref[...] + label * w2b_ref[...], axis=-1, keepdims=True)
           + b2_ref[0])                                           # (BT, 1); b2 from SMEM
    out_ref[...] = out.astype(out_ref.dtype)


def prepare_params(params):
    """One-time weight preparation (transposes / splits / dtype layout), hoisted."""
    D = params["predict_linear_1_w"].shape[0]
    w2 = jnp.asarray(params["predict_linear_2_w"], jnp.float32)   # (1, 2D)
    return dict(
        # bf16 weight for the MXU matmul (f32 accumulate in-kernel).
        w1t=jnp.asarray(params["predict_linear_1_w"], jnp.float32).T.astype(jnp.bfloat16),
        b1=jnp.asarray(params["predict_linear_1_b"], jnp.float32).reshape(1, D),
        # label embedding stays f32: it runs on the VPU path (K = R is tiny).
        wlt=jnp.asarray(params["label_embedding_w"], jnp.float32).T,      # (R, D)
        bl=jnp.asarray(params["label_embedding_b"], jnp.float32).reshape(1, D),
        w2a=w2[0, :D].reshape(1, D),                                      # VPU rows
        w2b=w2[0, D:].reshape(1, D),
        b2=jnp.asarray(params["predict_linear_2_b"], jnp.float32).reshape(1,),  # SMEM scalar
    )


def _device_kind():
    try:
        return jax.devices()[0].device_kind.lower()
    except Exception:
        return ""


def _pick_tiling(B, R, D, vis_dtype, txt_dtype, batch_tile):
    """Per-generation batch tile, VMEM limit and grid-axis semantics."""
    kind = _device_kind()
    is_v7 = "v7" in kind
    # v7x: 64 MiB VMEM per TC -> smaller feature-buffer budget; v5e/v6e: 128 MiB.
    feat_budget = (32 if is_v7 else 64) * 1024 * 1024
    vmem_limit = (48 if is_v7 else 96) * 1024 * 1024

    if batch_tile is None:
        lane = 128
        fb = jnp.dtype(vis_dtype).itemsize + jnp.dtype(txt_dtype).itemsize
        # Per batch row: double-buffered vis+txt blocks, lane-padded cxmi/label
        # blocks, lane-padded out block, plus in-kernel f32 temps (acc/h/label/slack).
        stream_row = R * D * fb + 2 * lane * 4 + lane * 4
        per_row = 2 * stream_row + 24 * D
        bt = max(8, (feat_budget // per_row) // 8 * 8)   # multiple of 8 (sublane)
        bt = min(bt, 2048)
        batch_tile = B if bt >= B else bt                # BT == B or BT % 8 == 0

    # Megacore: on v7x (2 TensorCores/chip) CORE_PARALLEL actually splits the
    # batch grid axis across cores; plain "parallel" on single-TC v5e/v6e.
    if is_v7 and hasattr(pltpu, "CORE_PARALLEL"):
        semantics = (pltpu.CORE_PARALLEL,)
    else:
        semantics = ("parallel",)
    return batch_tile, vmem_limit, semantics


@functools.partial(jax.jit, static_argnames=("batch_tile",))
def model_forward(retrieved_label_list, retrieved_visual_feature_embedding_cls,
                  retrieved_textual_feature_embedding, cxmi, prepped,
                  batch_tile=None):
    """Pallas forward of the post-graph head. Returns (B, 1) float32."""
    vis = retrieved_visual_feature_embedding_cls
    txt = retrieved_textual_feature_embedding
    B, R, D = vis.shape

    BT, vmem_limit, semantics = _pick_tiling(B, R, D, vis.dtype, txt.dtype, batch_tile)
    num_blocks = pl.cdiv(B, BT)

    # Default double-buffering: at large BT the DMA per step dwarfs compute, so
    # a third buffer only costs VMEM that is better spent on a larger BT.
    feat_spec = pl.BlockSpec((BT, R, D), lambda i: (i, 0, 0))
    row_spec = pl.BlockSpec((BT, R), lambda i: (i, 0))

    def resident(shape):
        # Weights/biases: same block every step -> stay VMEM-resident.
        return pl.BlockSpec(shape, lambda i: tuple(0 for _ in shape))

    smem_spec = pl.BlockSpec(memory_space=pltpu.MemorySpace.SMEM)

    in_specs = [
        feat_spec,                               # vis  (B, R, D)  bf16/f32 stream
        feat_spec,                               # txt  (B, R, D)  bf16/f32 stream
        row_spec,                                # cxmi (B, R)
        row_spec,                                # retrieved_label_list (B, R)
        resident((D, D)),                        # w1t (bf16)
        resident((1, D)),                        # b1
        resident((R, D)),                        # wlt
        resident((1, D)),                        # bl
        resident((1, D)),                        # w2a (row)
        resident((1, D)),                        # w2b (row)
        smem_spec,                               # b2 (SMEM scalar)
    ]
    out_spec = pl.BlockSpec((BT, 1), lambda i: (i, 0))

    return pl.pallas_call(
        _head_kernel,
        out_shape=jax.ShapeDtypeStruct((B, 1), jnp.float32),
        grid=(num_blocks,),
        in_specs=in_specs,
        out_specs=out_spec,
        compiler_params=pltpu.CompilerParams(
            dimension_semantics=semantics,
            vmem_limit_bytes=vmem_limit,
        ),
    )(vis, txt, cxmi, retrieved_label_list,
      prepped["w1t"], prepped["b1"], prepped["wlt"], prepped["bl"],
      prepped["w2a"], prepped["w2b"], prepped["b2"])


def _reference(retrieved_label_list, vis, txt, cxmi, params):
    packed = jnp.concatenate([vis, txt], axis=1)                      # (B, 2R, D)
    w = jnp.concatenate([cxmi, cxmi], axis=1)[:, :, None]             # (B, 2R, 1)
    w = w / jnp.sum(w, axis=1, keepdims=True)
    pooled = jnp.squeeze(jnp.matmul(jnp.transpose(packed, (0, 2, 1)), w), -1)
    h = jnp.maximum(pooled @ params["predict_linear_1_w"].T
                    + params["predict_linear_1_b"], 0.0)
    label = (retrieved_label_list @ params["label_embedding_w"].T
             + params["label_embedding_b"])
    cat = jnp.concatenate([h, label], axis=1)
    return cat @ params["predict_linear_2_w"].T + params["predict_linear_2_b"]


if __name__ == "__main__":
    B, R, D = 2, 8, 128          # batch, retrieval_num, feature_dim (small)
    key = jax.random.PRNGKey(0)
    ks = jax.random.split(key, 12)

    # inputs implied by Model.forward
    retrieved_label_list = jax.random.normal(ks[0], (B, R), jnp.float32)
    mean_pooling_vec = jax.random.normal(ks[1], (B, D), jnp.float32)        # graph-only
    merge_text_vec = jax.random.normal(ks[2], (B, D), jnp.float32)          # graph-only
    retrieved_visual_feature_embedding_cls = jax.random.normal(ks[3], (B, R, D), jnp.float32)
    retrieved_textual_feature_embedding = jax.random.normal(ks[4], (B, R, D), jnp.float32)
    text_mask = jnp.ones((B, R), jnp.float32)                               # graph-only
    img_mask = jnp.ones((B, R), jnp.float32)                                # graph-only
    CXMI = jax.random.uniform(ks[5], (B, R), jnp.float32, 0.1, 1.0)

    # deterministic parameters (only the layers on the implemented path)
    scale = 0.02
    params = {
        "predict_linear_1_w": scale * jax.random.normal(ks[6], (D, D), jnp.float32),
        "predict_linear_1_b": scale * jax.random.normal(ks[7], (D,), jnp.float32),
        "label_embedding_w": scale * jax.random.normal(ks[8], (D, R), jnp.float32),
        "label_embedding_b": scale * jax.random.normal(ks[9], (D,), jnp.float32),
        "predict_linear_2_w": scale * jax.random.normal(ks[10], (1, 2 * D), jnp.float32),
        "predict_linear_2_b": scale * jax.random.normal(ks[11], (1,), jnp.float32),
    }

    prepped = prepare_params(params)   # one-time weight layout / dtype prep (hoisted)

    # Feed the dominant (B, R, D) feature streams as bf16 (kernel accumulates
    # in f32); the reference sees the same bf16 values upcast to f32 so the
    # check isolates kernel error from input quantization.
    vis_bf = retrieved_visual_feature_embedding_cls.astype(jnp.bfloat16)
    txt_bf = retrieved_textual_feature_embedding.astype(jnp.bfloat16)

    out = model_forward(retrieved_label_list, vis_bf, txt_bf, CXMI, prepped)
    out = jax.block_until_ready(out)

    ref = _reference(retrieved_label_list,
                     vis_bf.astype(jnp.float32),
                     txt_bf.astype(jnp.float32),
                     CXMI, params)
    assert out.shape == (B, 1)
    # Small tolerance slack for the bf16 weight / MXU-operand quantization.
    assert jnp.allclose(out, ref, atol=2e-3, rtol=2e-3)
    print("KERNEL_OK")
</pallas_src>

<mosaic_0001>
module attributes {stable_mosaic.version = 11 : i64} {
  func.func @_head_kernel(%arg0: i32, %arg1: memref<2x8x128xbf16, #tpu.memory_space<vmem>>, %arg2: memref<2x8x128xbf16, #tpu.memory_space<vmem>>, %arg3: memref<2x8xf32, #tpu.memory_space<vmem>>, %arg4: memref<2x8xf32, #tpu.memory_space<vmem>>, %arg5: memref<128x128xbf16, #tpu.memory_space<vmem>>, %arg6: memref<1x128xf32, #tpu.memory_space<vmem>>, %arg7: memref<8x128xf32, #tpu.memory_space<vmem>>, %arg8: memref<1x128xf32, #tpu.memory_space<vmem>>, %arg9: memref<1x128xf32, #tpu.memory_space<vmem>>, %arg10: memref<1x128xf32, #tpu.memory_space<vmem>>, %arg11: memref<1xf32, #tpu.memory_space<smem>>, %arg12: memref<2x1xf32, #tpu.memory_space<vmem>>) attributes {dimension_semantics = [#tpu.dimension_semantics<parallel>], iteration_bounds = array<i64: 1>, scalar_prefetch = 0 : i64, scratch_operands = 0 : i64, tpu.core_type = #tpu.core_type<tc>, window_params = [{transform_indices = @transform_0, window_bounds = array<i64: 2, 8, 128>}, {transform_indices = @transform_1, window_bounds = array<i64: 2, 8, 128>}, {transform_indices = @transform_2, window_bounds = array<i64: 2, 8>}, {transform_indices = @transform_3, window_bounds = array<i64: 2, 8>}, {pipeline_mode = #tpu.pipeline_mode<synchronous>, transform_indices = @transform_4, window_bounds = array<i64: 128, 128>}, {pipeline_mode = #tpu.pipeline_mode<synchronous>, transform_indices = @transform_5, window_bounds = array<i64: 1, 128>}, {pipeline_mode = #tpu.pipeline_mode<synchronous>, transform_indices = @transform_6, window_bounds = array<i64: 8, 128>}, {pipeline_mode = #tpu.pipeline_mode<synchronous>, transform_indices = @transform_7, window_bounds = array<i64: 1, 128>}, {pipeline_mode = #tpu.pipeline_mode<synchronous>, transform_indices = @transform_8, window_bounds = array<i64: 1, 128>}, {pipeline_mode = #tpu.pipeline_mode<synchronous>, transform_indices = @transform_9, window_bounds = array<i64: 1, 128>}, {transform_indices = @transform_10, window_bounds = array<i64: 1>}, {transform_indices = @transform_11, window_bounds = array<i64: 2, 1>}]} {
    %c0 = arith.constant 0 : index
    %c0_0 = arith.constant 0 : index
    %0 = vector.load %arg3[%c0, %c0_0] : memref<2x8xf32, #tpu.memory_space<vmem>>, vector<2x8xf32>
    %cst = arith.constant dense<0.000000e+00> : vector<2xf32>
    %1 = vector.multi_reduction <add>, %0, %cst [1] : vector<2x8xf32> to vector<2xf32>
    %2 = vector.shape_cast %1 : vector<2xf32> to vector<2x1xf32>
    %cst_1 = arith.constant 5.000000e-01 : f32
    %3 = vector.broadcast %cst_1 : f32 to vector<2x1xf32>
    %4 = arith.divf %3, %2 : vector<2x1xf32>
    %c0_2 = arith.constant 0 : index
    %c0_3 = arith.constant 0 : index
    %c0_4 = arith.constant 0 : index
    %5 = vector.load %arg1[%c0_2, %c0_3, %c0_4] : memref<2x8x128xbf16, #tpu.memory_space<vmem>>, vector<2x8x128xbf16>
    %c0_5 = arith.constant 0 : index
    %c0_6 = arith.constant 0 : index
    %c0_7 = arith.constant 0 : index
    %6 = vector.load %arg2[%c0_5, %c0_6, %c0_7] : memref<2x8x128xbf16, #tpu.memory_space<vmem>>, vector<2x8x128xbf16>
    %cst_8 = arith.constant 0.000000e+00 : f32
    %7 = vector.broadcast %cst_8 : f32 to vector<2x128xf32>
    %8 = vector.extract_strided_slice %5 {offsets = [0, 0, 0], sizes = [2, 1, 128], strides = [1, 1, 1]} : vector<2x8x128xbf16> to vector<2x1x128xbf16>
    %9 = vector.shape_cast %8 : vector<2x1x128xbf16> to vector<2x128xbf16>
    %10 = arith.extf %9 : vector<2x128xbf16> to vector<2x128xf32>
    %11 = vector.extract_strided_slice %6 {offsets = [0, 0, 0], sizes = [2, 1, 128], strides = [1, 1, 1]} : vector<2x8x128xbf16> to vector<2x1x128xbf16>
    %12 = vector.shape_cast %11 : vector<2x1x128xbf16> to vector<2x128xbf16>
    %13 = arith.extf %12 : vector<2x128xbf16> to vector<2x128xf32>
    %14 = vector.extract_strided_slice %0 {offsets = [0, 0], sizes = [2, 1], strides = [1, 1]} : vector<2x8xf32> to vector<2x1xf32>
    %15 = arith.addf %10, %13 : vector<2x128xf32>
    %16 = vector.broadcast %14 : vector<2x1xf32> to vector<2x128xf32>
    %17 = arith.mulf %16, %15 : vector<2x128xf32>
    %18 = arith.addf %7, %17 : vector<2x128xf32>
    %19 = vector.extract_strided_slice %5 {offsets = [0, 1, 0], sizes = [2, 1, 128], strides = [1, 1, 1]} : vector<2x8x128xbf16> to vector<2x1x128xbf16>
    %20 = vector.shape_cast %19 : vector<2x1x128xbf16> to vector<2x128xbf16>
    %21 = arith.extf %20 : vector<2x128xbf16> to vector<2x128xf32>
    %22 = vector.extract_strided_slice %6 {offsets = [0, 1, 0], sizes = [2, 1, 128], strides = [1, 1, 1]} : vector<2x8x128xbf16> to vector<2x1x128xbf16>
    %23 = vector.shape_cast %22 : vector<2x1x128xbf16> to vector<2x128xbf16>
    %24 = arith.extf %23 : vector<2x128xbf16> to vector<2x128xf32>
    %25 = vector.extract_strided_slice %0 {offsets = [0, 1], sizes = [2, 1], strides = [1, 1]} : vector<2x8xf32> to vector<2x1xf32>
    %26 = arith.addf %21, %24 : vector<2x128xf32>
    %27 = vector.broadcast %25 : vector<2x1xf32> to vector<2x128xf32>
    %28 = arith.mulf %27, %26 : vector<2x128xf32>
    %29 = arith.addf %18, %28 : vector<2x128xf32>
    %30 = vector.extract_strided_slice %5 {offsets = [0, 2, 0], sizes = [2, 1, 128], strides = [1, 1, 1]} : vector<2x8x128xbf16> to vector<2x1x128xbf16>
    %31 = vector.shape_cast %30 : vector<2x1x128xbf16> to vector<2x128xbf16>
    %32 = arith.extf %31 : vector<2x128xbf16> to vector<2x128xf32>
    %33 = vector.extract_strided_slice %6 {offsets = [0, 2, 0], sizes = [2, 1, 128], strides = [1, 1, 1]} : vector<2x8x128xbf16> to vector<2x1x128xbf16>
    %34 = vector.shape_cast %33 : vector<2x1x128xbf16> to vector<2x128xbf16>
    %35 = arith.extf %34 : vector<2x128xbf16> to vector<2x128xf32>
    %36 = vector.extract_strided_slice %0 {offsets = [0, 2], sizes = [2, 1], strides = [1, 1]} : vector<2x8xf32> to vector<2x1xf32>
    %37 = arith.addf %32, %35 : vector<2x128xf32>
    %38 = vector.broadcast %36 : vector<2x1xf32> to vector<2x128xf32>
    %39 = arith.mulf %38, %37 : vector<2x128xf32>
    %40 = arith.addf %29, %39 : vector<2x128xf32>
    %41 = vector.extract_strided_slice %5 {offsets = [0, 3, 0], sizes = [2, 1, 128], strides = [1, 1, 1]} : vector<2x8x128xbf16> to vector<2x1x128xbf16>
    %42 = vector.shape_cast %41 : vector<2x1x128xbf16> to vector<2x128xbf16>
    %43 = arith.extf %42 : vector<2x128xbf16> to vector<2x128xf32>
    %44 = vector.extract_strided_slice %6 {offsets = [0, 3, 0], sizes = [2, 1, 128], strides = [1, 1, 1]} : vector<2x8x128xbf16> to vector<2x1x128xbf16>
    %45 = vector.shape_cast %44 : vector<2x1x128xbf16> to vector<2x128xbf16>
    %46 = arith.extf %45 : vector<2x128xbf16> to vector<2x128xf32>
    %47 = vector.extract_strided_slice %0 {offsets = [0, 3], sizes = [2, 1], strides = [1, 1]} : vector<2x8xf32> to vector<2x1xf32>
    %48 = arith.addf %43, %46 : vector<2x128xf32>
    %49 = vector.broadcast %47 : vector<2x1xf32> to vector<2x128xf32>
    %50 = arith.mulf %49, %48 : vector<2x128xf32>
    %51 = arith.addf %40, %50 : vector<2x128xf32>
    %52 = vector.extract_strided_slice %5 {offsets = [0, 4, 0], sizes = [2, 1, 128], strides = [1, 1, 1]} : vector<2x8x128xbf16> to vector<2x1x128xbf16>
    %53 = vector.shape_cast %52 : vector<2x1x128xbf16> to vector<2x128xbf16>
    %54 = arith.extf %53 : vector<2x128xbf16> to vector<2x128xf32>
    %55 = vector.extract_strided_slice %6 {offsets = [0, 4, 0], sizes = [2, 1, 128], strides = [1, 1, 1]} : vector<2x8x128xbf16> to vector<2x1x128xbf16>
    %56 = vector.shape_cast %55 : vector<2x1x128xbf16> to vector<2x128xbf16>
    %57 = arith.extf %56 : vector<2x128xbf16> to vector<2x128xf32>
    %58 = vector.extract_strided_slice %0 {offsets = [0, 4], sizes = [2, 1], strides = [1, 1]} : vector<2x8xf32> to vector<2x1xf32>
    %59 = arith.addf %54, %57 : vector<2x128xf32>
    %60 = vector.broadcast %58 : vector<2x1xf32> to vector<2x128xf32>
    %61 = arith.mulf %60, %59 : vector<2x128xf32>
    %62 = arith.addf %51, %61 : vector<2x128xf32>
    %63 = vector.extract_strided_slice %5 {offsets = [0, 5, 0], sizes = [2, 1, 128], strides = [1, 1, 1]} : vector<2x8x128xbf16> to vector<2x1x128xbf16>
    %64 = vector.shape_cast %63 : vector<2x1x128xbf16> to vector<2x128xbf16>
    %65 = arith.extf %64 : vector<2x128xbf16> to vector<2x128xf32>
    %66 = vector.extract_strided_slice %6 {offsets = [0, 5, 0], sizes = [2, 1, 128], strides = [1, 1, 1]} : vector<2x8x128xbf16> to vector<2x1x128xbf16>
    %67 = vector.shape_cast %66 : vector<2x1x128xbf16> to vector<2x128xbf16>
    %68 = arith.extf %67 : vector<2x128xbf16> to vector<2x128xf32>
    %69 = vector.extract_strided_slice %0 {offsets = [0, 5], sizes = [2, 1], strides = [1, 1]} : vector<2x8xf32> to vector<2x1xf32>
    %70 = arith.addf %65, %68 : vector<2x128xf32>
    %71 = vector.broadcast %69 : vector<2x1xf32> to vector<2x128xf32>
    %72 = arith.mulf %71, %70 : vector<2x128xf32>
    %73 = arith.addf %62, %72 : vector<2x128xf32>
    %74 = vector.extract_strided_slice %5 {offsets = [0, 6, 0], sizes = [2, 1, 128], strides = [1, 1, 1]} : vector<2x8x128xbf16> to vector<2x1x128xbf16>
    %75 = vector.shape_cast %74 : vector<2x1x128xbf16> to vector<2x128xbf16>
    %76 = arith.extf %75 : vector<2x128xbf16> to vector<2x128xf32>
    %77 = vector.extract_strided_slice %6 {offsets = [0, 6, 0], sizes = [2, 1, 128], strides = [1, 1, 1]} : vector<2x8x128xbf16> to vector<2x1x128xbf16>
    %78 = vector.shape_cast %77 : vector<2x1x128xbf16> to vector<2x128xbf16>
    %79 = arith.extf %78 : vector<2x128xbf16> to vector<2x128xf32>
    %80 = vector.extract_strided_slice %0 {offsets = [0, 6], sizes = [2, 1], strides = [1, 1]} : vector<2x8xf32> to vector<2x1xf32>
    %81 = arith.addf %76, %79 : vector<2x128xf32>
    %82 = vector.broadcast %80 : vector<2x1xf32> to vector<2x128xf32>
    %83 = arith.mulf %82, %81 : vector<2x128xf32>
    %84 = arith.addf %73, %83 : vector<2x128xf32>
    %85 = vector.extract_strided_slice %5 {offsets = [0, 7, 0], sizes = [2, 1, 128], strides = [1, 1, 1]} : vector<2x8x128xbf16> to vector<2x1x128xbf16>
    %86 = vector.shape_cast %85 : vector<2x1x128xbf16> to vector<2x128xbf16>
    %87 = arith.extf %86 : vector<2x128xbf16> to vector<2x128xf32>
    %88 = vector.extract_strided_slice %6 {offsets = [0, 7, 0], sizes = [2, 1, 128], strides = [1, 1, 1]} : vector<2x8x128xbf16> to vector<2x1x128xbf16>
    %89 = vector.shape_cast %88 : vector<2x1x128xbf16> to vector<2x128xbf16>
    %90 = arith.extf %89 : vector<2x128xbf16> to vector<2x128xf32>
    %91 = vector.extract_strided_slice %0 {offsets = [0, 7], sizes = [2, 1], strides = [1, 1]} : vector<2x8xf32> to vector<2x1xf32>
    %92 = arith.addf %87, %90 : vector<2x128xf32>
    %93 = vector.broadcast %91 : vector<2x1xf32> to vector<2x128xf32>
    %94 = arith.mulf %93, %92 : vector<2x128xf32>
    %95 = arith.addf %84, %94 : vector<2x128xf32>
    %96 = vector.broadcast %4 : vector<2x1xf32> to vector<2x128xf32>
    %97 = arith.mulf %95, %96 : vector<2x128xf32>
    %c0_9 = arith.constant 0 : index
    %c0_10 = arith.constant 0 : index
    %98 = vector.load %arg5[%c0_9, %c0_10] : memref<128x128xbf16, #tpu.memory_space<vmem>>, vector<128x128xbf16>
    %99 = arith.truncf %97 : vector<2x128xf32> to vector<2x128xbf16>
    %cst_11 = arith.constant dense<0.000000e+00> : vector<2x128xf32>
    %100 = tpu.matmul %99, %98, %cst_11 {dimension_numbers = #tpu.dot_dimension_numbers<[1], [0], [0], [1], [0, 0, 1, 1], [], []>} : vector<2x128xbf16>, vector<128x128xbf16>, vector<2x128xf32> -> vector<2x128xf32>
    %c0_12 = arith.constant 0 : index
    %c0_13 = arith.constant 0 : index
    %101 = vector.load %arg6[%c0_12, %c0_13] : memref<1x128xf32, #tpu.memory_space<vmem>>, vector<1x128xf32>
    %102 = vector.broadcast %101 : vector<1x128xf32> to vector<2x128xf32>
    %103 = arith.addf %100, %102 : vector<2x128xf32>
    %cst_14 = arith.constant 0.000000e+00 : f32
    %104 = vector.broadcast %cst_14 : f32 to vector<2x128xf32>
    %105 = arith.maximumf %103, %104 : vector<2x128xf32>
    %c0_15 = arith.constant 0 : index
    %c0_16 = arith.constant 0 : index
    %106 = vector.load %arg4[%c0_15, %c0_16] : memref<2x8xf32, #tpu.memory_space<vmem>>, vector<2x8xf32>
    %c0_17 = arith.constant 0 : index
    %c0_18 = arith.constant 0 : index
    %107 = vector.load %arg7[%c0_17, %c0_18] : memref<8x128xf32, #tpu.memory_space<vmem>>, vector<8x128xf32>
    %cst_19 = arith.constant 0.000000e+00 : f32
    %108 = vector.broadcast %cst_19 : f32 to vector<2x128xf32>
    %109 = vector.extract_strided_slice %106 {offsets = [0, 0], sizes = [2, 1], strides = [1, 1]} : vector<2x8xf32> to vector<2x1xf32>
    %110 = vector.extract_strided_slice %107 {offsets = [0, 0], sizes = [1, 128], strides = [1, 1]} : vector<8x128xf32> to vector<1x128xf32>
    %111 = vector.broadcast %109 : vector<2x1xf32> to vector<2x128xf32>
    %112 = vector.broadcast %110 : vector<1x128xf32> to vector<2x128xf32>
    %113 = arith.mulf %111, %112 : vector<2x128xf32>
    %114 = arith.addf %108, %113 : vector<2x128xf32>
    %115 = vector.extract_strided_slice %106 {offsets = [0, 1], sizes = [2, 1], strides = [1, 1]} : vector<2x8xf32> to vector<2x1xf32>
    %116 = vector.extract_strided_slice %107 {offsets = [1, 0], sizes = [1, 128], strides = [1, 1]} : vector<8x128xf32> to vector<1x128xf32>
    %117 = vector.broadcast %115 : vector<2x1xf32> to vector<2x128xf32>
    %118 = vector.broadcast %116 : vector<1x128xf32> to vector<2x128xf32>
    %119 = arith.mulf %117, %118 : vector<2x128xf32>
    %120 = arith.addf %114, %119 : vector<2x128xf32>
    %121 = vector.extract_strided_slice %106 {offsets = [0, 2], sizes = [2, 1], strides = [1, 1]} : vector<2x8xf32> to vector<2x1xf32>
    %122 = vector.extract_strided_slice %107 {offsets = [2, 0], sizes = [1, 128], strides = [1, 1]} : vector<8x128xf32> to vector<1x128xf32>
    %123 = vector.broadcast %121 : vector<2x1xf32> to vector<2x128xf32>
    %124 = vector.broadcast %122 : vector<1x128xf32> to vector<2x128xf32>
    %125 = arith.mulf %123, %124 : vector<2x128xf32>
    %126 = arith.addf %120, %125 : vector<2x128xf32>
    %127 = vector.extract_strided_slice %106 {offsets = [0, 3], sizes = [2, 1], strides = [1, 1]} : vector<2x8xf32> to vector<2x1xf32>
    %128 = vector.extract_strided_slice %107 {offsets = [3, 0], sizes = [1, 128], strides = [1, 1]} : vector<8x128xf32> to vector<1x128xf32>
    %129 = vector.broadcast %127 : vector<2x1xf32> to vector<2x128xf32>
    %130 = vector.broadcast %128 : vector<1x128xf32> to vector<2x128xf32>
    %131 = arith.mulf %129, %130 : vector<2x128xf32>
    %132 = arith.addf %126, %131 : vector<2x128xf32>
    %133 = vector.extract_strided_slice %106 {offsets = [0, 4], sizes = [2, 1], strides = [1, 1]} : vector<2x8xf32> to vector<2x1xf32>
    %134 = vector.extract_strided_slice %107 {offsets = [4, 0], sizes = [1, 128], strides = [1, 1]} : vector<8x128xf32> to vector<1x128xf32>
    %135 = vector.broadcast %133 : vector<2x1xf32> to vector<2x128xf32>
    %136 = vector.broadcast %134 : vector<1x128xf32> to vector<2x128xf32>
    %137 = arith.mulf %135, %136 : vector<2x128xf32>
    %138 = arith.addf %132, %137 : vector<2x128xf32>
    %139 = vector.extract_strided_slice %106 {offsets = [0, 5], sizes = [2, 1], strides = [1, 1]} : vector<2x8xf32> to vector<2x1xf32>
    %140 = vector.extract_strided_slice %107 {offsets = [5, 0], sizes = [1, 128], strides = [1, 1]} : vector<8x128xf32> to vector<1x128xf32>
    %141 = vector.broadcast %139 : vector<2x1xf32> to vector<2x128xf32>
    %142 = vector.broadcast %140 : vector<1x128xf32> to vector<2x128xf32>
    %143 = arith.mulf %141, %142 : vector<2x128xf32>
    %144 = arith.addf %138, %143 : vector<2x128xf32>
    %145 = vector.extract_strided_slice %106 {offsets = [0, 6], sizes = [2, 1], strides = [1, 1]} : vector<2x8xf32> to vector<2x1xf32>
    %146 = vector.extract_strided_slice %107 {offsets = [6, 0], sizes = [1, 128], strides = [1, 1]} : vector<8x128xf32> to vector<1x128xf32>
    %147 = vector.broadcast %145 : vector<2x1xf32> to vector<2x128xf32>
    %148 = vector.broadcast %146 : vector<1x128xf32> to vector<2x128xf32>
    %149 = arith.mulf %147, %148 : vector<2x128xf32>
    %150 = arith.addf %144, %149 : vector<2x128xf32>
    %151 = vector.extract_strided_slice %106 {offsets = [0, 7], sizes = [2, 1], strides = [1, 1]} : vector<2x8xf32> to vector<2x1xf32>
    %152 = vector.extract_strided_slice %107 {offsets = [7, 0], sizes = [1, 128], strides = [1, 1]} : vector<8x128xf32> to vector<1x128xf32>
    %153 = vector.broadcast %151 : vector<2x1xf32> to vector<2x128xf32>
    %154 = vector.broadcast %152 : vector<1x128xf32> to vector<2x128xf32>
    %155 = arith.mulf %153, %154 : vector<2x128xf32>
    %156 = arith.addf %150, %155 : vector<2x128xf32>
    %c0_20 = arith.constant 0 : index
    %c0_21 = arith.constant 0 : index
    %157 = vector.load %arg8[%c0_20, %c0_21] : memref<1x128xf32, #tpu.memory_space<vmem>>, vector<1x128xf32>
    %158 = vector.broadcast %157 : vector<1x128xf32> to vector<2x128xf32>
    %159 = arith.addf %156, %158 : vector<2x128xf32>
    %c0_22 = arith.constant 0 : index
    %c0_23 = arith.constant 0 : index
    %160 = vector.load %arg9[%c0_22, %c0_23] : memref<1x128xf32, #tpu.memory_space<vmem>>, vector<1x128xf32>
    %161 = vector.broadcast %160 : vector<1x128xf32> to vector<2x128xf32>
    %162 = arith.mulf %105, %161 : vector<2x128xf32>
    %c0_24 = arith.constant 0 : index
    %c0_25 = arith.constant 0 : index
    %163 = vector.load %arg10[%c0_24, %c0_25] : memref<1x128xf32, #tpu.memory_space<vmem>>, vector<1x128xf32>
    %164 = vector.broadcast %163 : vector<1x128xf32> to vector<2x128xf32>
    %165 = arith.mulf %159, %164 : vector<2x128xf32>
    %166 = arith.addf %162, %165 : vector<2x128xf32>
    %cst_26 = arith.constant dense<0.000000e+00> : vector<2xf32>
    %167 = vector.multi_reduction <add>, %166, %cst_26 [1] : vector<2x128xf32> to vector<2xf32>
    %168 = vector.shape_cast %167 : vector<2xf32> to vector<2x1xf32>
    %c0_27 = arith.constant 0 : index
    %169 = memref.load %arg11[%c0_27] : memref<1xf32, #tpu.memory_space<smem>>
    %170 = vector.broadcast %169 : f32 to vector<2x1xf32>
    %171 = arith.addf %168, %170 : vector<2x1xf32>
    %c0_28 = arith.constant 0 : index
    %c0_29 = arith.constant 0 : index
    %172 = vector.load %arg12[%c0_28, %c0_29] : memref<2x1xf32, #tpu.memory_space<vmem>>, vector<2x1xf32>
    tpu.vector_store %arg12[%c0_28, %c0_29], %171 {strides = array<i32>} : memref<2x1xf32, #tpu.memory_space<vmem>>, vector<2x1xf32>,
    return
  }
  func.func @transform_0(%arg0: i32) -> (i32, i32, i32) {
    %c0_i32 = arith.constant 0 : i32
    %c0_i32_0 = arith.constant 0 : i32
    %c0_i32_1 = arith.constant 0 : i32
    return %arg0, %c0_i32, %c0_i32_0 : i32, i32, i32
  }
  func.func @transform_1(%arg0: i32) -> (i32, i32, i32) {
    %c0_i32 = arith.constant 0 : i32
    %c0_i32_0 = arith.constant 0 : i32
    %c0_i32_1 = arith.constant 0 : i32
    return %arg0, %c0_i32, %c0_i32_0 : i32, i32, i32
  }
  func.func @transform_2(%arg0: i32) -> (i32, i32) {
    %c0_i32 = arith.constant 0 : i32
    %c0_i32_0 = arith.constant 0 : i32
    return %arg0, %c0_i32 : i32, i32
  }
  func.func @transform_3(%arg0: i32) -> (i32, i32) {
    %c0_i32 = arith.constant 0 : i32
    %c0_i32_0 = arith.constant 0 : i32
    return %arg0, %c0_i32 : i32, i32
  }
  func.func @transform_4(%arg0: i32) -> (i32, i32) {
    %c0_i32 = arith.constant 0 : i32
    %c0_i32_0 = arith.constant 0 : i32
    %c0_i32_1 = arith.constant 0 : i32
    return %c0_i32, %c0_i32_0 : i32, i32
  }
  func.func @transform_5(%arg0: i32) -> (i32, i32) {
    %c0_i32 = arith.constant 0 : i32
    %c0_i32_0 = arith.constant 0 : i32
    %c0_i32_1 = arith.constant 0 : i32
    return %c0_i32, %c0_i32_0 : i32, i32
  }
  func.func @transform_6(%arg0: i32) -> (i32, i32) {
    %c0_i32 = arith.constant 0 : i32
    %c0_i32_0 = arith.constant 0 : i32
    %c0_i32_1 = arith.constant 0 : i32
    return %c0_i32, %c0_i32_0 : i32, i32
  }
  func.func @transform_7(%arg0: i32) -> (i32, i32) {
    %c0_i32 = arith.constant 0 : i32
    %c0_i32_0 = arith.constant 0 : i32
    %c0_i32_1 = arith.constant 0 : i32
    return %c0_i32, %c0_i32_0 : i32, i32
  }
  func.func @transform_8(%arg0: i32) -> (i32, i32) {
    %c0_i32 = arith.constant 0 : i32
    %c0_i32_0 = arith.constant 0 : i32
    %c0_i32_1 = arith.constant 0 : i32
    return %c0_i32, %c0_i32_0 : i32, i32
  }
  func.func @transform_9(%arg0: i32) -> (i32, i32) {
    %c0_i32 = arith.constant 0 : i32
    %c0_i32_0 = arith.constant 0 : i32
    %c0_i32_1 = arith.constant 0 : i32
    return %c0_i32, %c0_i32_0 : i32, i32
  }
  func.func @transform_10(%arg0: i32) -> i32 {
    %c0_i32 = arith.constant 0 : i32
    %c0_i32_0 = arith.constant 0 : i32
    return %c0_i32 : i32
  }
  func.func @transform_11(%arg0: i32) -> (i32, i32) {
    %c0_i32 = arith.constant 0 : i32
    %c0_i32_0 = arith.constant 0 : i32
    return %arg0, %c0_i32 : i32, i32
  }
}

</mosaic_0001>

<bundles_post_ra>
// kernel: model_forward.1
= control target key start
LH: loop header
LB: loop body
LE: loop exit
PB: predicated region body
PF: predicated region fallthrough
CT: control target
= control target key end

     0   :  { %17 = vsyncpa [#allocation4], 0  ;;  %s863_s0 = inlined_call_operand.hbm [shape: bf16[2,8,128], index: 0, kind: input, shape index: {}]   ;;  %s864_s1 = inlined_call_operand.hbm [shape: bf16[2,8,128], index: 1, kind: input, shape index: {}]   ;;  %s865_s2 = inlined_call_operand.vmem [shape: f32[2,8], index: 2, kind: input, shape index: {}]   ;;  %s866_s3 = inlined_call_operand.hbm [shape: f32[2,8], index: 3, kind: input, shape index: {}]   ;;  %s867_s4 = inlined_call_operand.hbm [shape: bf16[128,128], index: 4, kind: input, shape index: {}]   ;;  %s868_s5 = inlined_call_operand.hbm [shape: f32[1,128], index: 5, kind: input, shape index: {}]   ;;  %s869_s6 = inlined_call_operand.vmem [shape: f32[8,128], index: 6, kind: input, shape index: {}]   ;;  %s870_s7 = inlined_call_operand.hbm [shape: f32[1,128], index: 7, kind: input, shape index: {}]   ;;  %s871_s8 = inlined_call_operand.hbm [shape: f32[1,128], index: 8, kind: input, shape index: {}]   ;;  %s872_s9 = inlined_call_operand.hbm [shape: f32[1,128], index: 9, kind: input, shape index: {}]   ;;  %s873_s10 = inlined_call_operand.<no memory space> [shape: f32[1], index: 10, kind: input, shape index: {}]   ;;  %s874_s11 = inlined_call_operand.vmem [shape: f32[2,1], index: 11, kind: output, shape index: {}]  }
   0x1   :  { %18 = vsyncpa [#allocation6], 0 }
   0x2   :  { %19 = vsyncpa [#allocation9], 0 }
   0x3   :  { %20 = vsyncpa [#allocation12], 0 }
   0x4   :  { %21 = vsyncpa [#allocation15], 0  ;;  %s39_s19 = sshll.u32 %s864_s1, 4  ;;  %s734_s20 = smov [#allocation5]   ;;  %s40_s19 = int_to_ptr.hbm [resolvable:$true] %s39_s19 }
   0x5   :  { %s41_s21 = sshll.u32 %s734_s20, 4  ;;  %s65_s24 = sshll.u32 %s867_s4, 4  ;;  %s42_s21 = int_to_ptr.vmem [resolvable:$true] %s41_s21  ;;  %s66_s24 = int_to_ptr.hbm [resolvable:$true] %s65_s24 }
   0x6   :  { %s735_s25 = smov 64   ;;  %s736_s26 = smov 4  }
   0x7   :  { %47 = dma.hbm_to_vmem [thread:$0]  %s40_s19, 128, %s42_s21, [#allocation6], %s735_s25, %s735_s25, %s736_s26  }
   0x8   :  { %s737_s27 = smov [#allocation8]   ;;  %s92_s12 = sshll.u32 %s870_s7, 4  ;;  %s93_s12 = int_to_ptr.hbm [resolvable:$true] %s92_s12 }
   0x9   :  { %s67_s28 = sshll.u32 %s737_s27, 4  ;;  %s26_s14 = sshll.u32 %s863_s0, 4  ;;  %s68_s28 = int_to_ptr.vmem [resolvable:$true] %s67_s28  ;;  %s27_s14 = int_to_ptr.hbm [resolvable:$true] %s26_s14 }
   0xa   :  { %73 = dma.hbm_to_vmem [thread:$0]  %s66_s24, 1024, %s68_s28, [#allocation9], %s735_s25, %s735_s25, %s736_s26  }
   0xb   :  { %s738_s15 = smov [#allocation11]   ;;  %s739_s4 = smov [#allocation3]  }
   0xc   :  { %s94_s16 = sshll.u32 %s738_s15, 4  ;;  %s28_s17 = sshll.u32 %s739_s4, 4  ;;  %s95_s16 = int_to_ptr.vmem [resolvable:$true] %s94_s16  ;;  %s29_s17 = int_to_ptr.vmem [resolvable:$true] %s28_s17 }
   0xd   :  { %97 = dma.hbm_to_vmem [thread:$0]  %s93_s12, 16, %s95_s16, [#allocation12]  }
   0xe   :  { %s55_s20 = sshll.u32 %s866_s3, 4  ;;  %s79_s22 = sshll.u32 %s868_s5, 4  ;;  %s56_s20 = int_to_ptr.hbm [resolvable:$true] %s55_s20  ;;  %s80_s22 = int_to_ptr.hbm [resolvable:$true] %s79_s22 }
   0xf   :  { %34 = dma.hbm_to_vmem [thread:$0]  %s27_s14, 128, %s29_s17, [#allocation4], %s735_s25, %s735_s25, %s736_s26  }
  0x10   :  { %s740_s23 = smov [#allocation7]   ;;  %s741_s24 = smov [#allocation10]  }
  0x11   :  { %s57_s0 = sshll.u32 %s740_s23, 4  ;;  %s81_s27 = sshll.u32 %s741_s24, 4  ;;  %s58_s0 = int_to_ptr.vmem [resolvable:$true] %s57_s0  ;;  %s82_s27 = int_to_ptr.vmem [resolvable:$true] %s81_s27 }
  0x12   :  { %60 = dma.hbm_to_vmem [thread:$0]  %s56_s20, 32, %s58_s0, [#allocation6]  }
  0x13   :  { %s103_s30 = sshll.u32 %s871_s8, 4  ;;  %s114_s26 = sshll.u32 %s872_s9, 4  ;;  %s104_s30 = int_to_ptr.hbm [resolvable:$true] %s103_s30  ;;  %s115_s26 = int_to_ptr.hbm [resolvable:$true] %s114_s26 }
  0x14   :  { %84 = dma.hbm_to_vmem [thread:$0]  %s80_s22, 16, %s82_s27, [#allocation9]  }
  0x15   :  { %s742_s12 = smov [#allocation13]   ;;  %s743_s1 = smov [#allocation14]  }
  0x16   :  { %s105_s5 = sshll.u32 %s742_s12, 4  ;;  %s116_s13 = sshll.u32 %s743_s1, 4  ;;  %s106_s5 = int_to_ptr.vmem [resolvable:$true] %s105_s5  ;;  %s117_s13 = int_to_ptr.vmem [resolvable:$true] %s116_s13 }
  0x17   :  { %108 = dma.hbm_to_vmem [thread:$0]  %s104_s30, 16, %s106_s5, [#allocation12]  }
  0x18   :  { %119 = dma.hbm_to_vmem [thread:$0]  %s115_s26, 16, %s117_s13, [#allocation15]  }
  0x19   :  { %724 = dma.done.wait [#allocation4], 128  }
  0x1a   :  { %725 = vsyncadd [#allocation4], 4294967168 }
  0x1b   :  { %726 = dma.done.wait [#allocation6], 160  }
  0x1c   :  { %727 = vsyncadd [#allocation6], 4294967136 }
  0x1d   :  { %728 = dma.done.wait [#allocation9], 1040  }
  0x1e   :  { %729 = vsyncadd [#allocation9], 4294966256 }
  0x1f   :  { %730 = dma.done.wait [#allocation12], 32  }
  0x20   :  { %731 = vsyncadd [#allocation12], 4294967264 }
  0x21   :  { %732 = dma.done.wait [#allocation15], 16  }
  0x22   :  { %733 = vsyncadd [#allocation15], 4294967280  ;;  %v744_v0 = vmov 1   ;;  %v745_v1 = vmov 0   ;;  %v746_v2 = vmov 3   ;;  %vm155_vm0 = vcmask 58368  }
  0x23   :  { %510 = vset.pattern.permute.xlu1 %v744_v0  ;;  %509 = vset.pattern.permute.xlu0 %v745_v1  ;;  %v154_v3 = vld [vmem:[%s865_s2] sm:$0x3]  ;;  %v747_v5 = vmov 2   ;;  %v748_v6 = vmov 4   ;;  %v749_v7 = vmov 5   ;;  %v750_v8 = vmov 6  }
  0x24   :  { %512 = vset.pattern.permute.xlu2 %v746_v2  ;;  %v156_v4 = vsel %vm155_vm0, %v154_v3, 0.0  ;;  %198 = vperm.xlu1 %510, %v154_v3   ;;  %v751_v9 = vmov 7   ;;  %v482_v10 = vld [vmem:[#allocation8 + $0x38] sm:$0xff]  ;;  %v481_v11 = vld [vmem:[#allocation8 + $0x30] sm:$0xff]  ;;  %v480_v13 = vld [vmem:[#allocation8 + $0x28] sm:$0xff]  ;;  %vm192_vm1 = vcmask 1041409  }
  0x25   :  { %217 = vperm.xlu2 %512, %v154_v3   ;;  %157 = vadd.xlane.f32.xlu0 %v156_v4  ;;  %v350_v12 = vld [vmem:[#allocation7] sm:$0x3]  ;;  %v479_v14 = vld [vmem:[#allocation8 + $0x20] sm:$0xff]  ;;  %v477_v16 = vld [vmem:[#allocation8 + $0x10] sm:$0xff]  ;;  %vm425_vm6 = vcmask 1041408   ;;  %vm432_vm7 = vcmask 1024  }
  0x26   :  { %336 = vmatpush.bf16.msra.mxu0 %v482_v10  ;;  %v478_v15 = vld [vmem:[#allocation8 + $0x18] sm:$0xff]  ;;  %v476_v18 = vld [vmem:[#allocation8 + $0x8] sm:$0xff]  ;;  %v475_v22 = vld [vmem:[#allocation8] sm:$0xff] }
  0x27   :  { %v484_v20 = vld [vmem:[#allocation3] sm:$0xff]   ;;  %v488_v21 = vld [vmem:[#allocation5] sm:$0xff]  }
  0x28   :  { %v485_v23 = vunpack.c.l.bf16 %v484_v20  ;;  %v489_v24 = vunpack.c.l.bf16 %v488_v21  ;;  %v486_v26 = vunpack.c.h.bf16 %v484_v20  ;;  %v490_v27 = vunpack.c.h.bf16 %v488_v21 }
  0x2a   :  { %337 = vmatpush.bf16.msra.mxu0 %v481_v11  ;;  %v182_v30 = vadd.f32 %v489_v24, %v485_v23  ;;  %v183_v31 = vadd.f32 %v490_v27, %v486_v26  ;;  %v351_v23 = vld [vmem:[%s869_s6] sm:$0xff] }
  0x2b   :  { %v357_v24 = vperm.slane %v351_v23, 0 }
  0x2c   :  { %511 = vset.pattern.permute.xlu1 %v747_v5  ;;  %v201_v33 = vrot.slane %v182_v30, 1  ;;  %v191_v34 = vrot.slane %v183_v31, 7  ;;  %v210_v35 = vrot.slane %v182_v30, 2  ;;  %v211_v36 = vrot.slane %v183_v31, 1 }
  0x2d   :  { %513 = vset.pattern.permute.xlu2 %v748_v6  ;;  %207 = vperm.xlu1 %511, %v154_v3   ;;  %v220_v39 = vrot.slane %v182_v30, 3  ;;  %v221_v40 = vrot.slane %v183_v31, 2  ;;  %v230_v46 = vrot.slane %v182_v30, 4  ;;  %v231_v47 = vrot.slane %v183_v31, 3 }
  0x2e   :  { %227 = vperm.xlu2 %513, %v154_v3   ;;  %338 = vmatpush.bf16.msra.mxu0 %v480_v13  ;;  %v202_v41 = vsel %vm192_vm1, %v183_v31, %v201_v33  ;;  %v193_v42 = vsel %vm192_vm1, %v191_v34, %v182_v30  ;;  %v212_v44 = vsel %vm192_vm1, %v211_v36, %v210_v35  ;;  %v240_v52 = vrot.slane %v182_v30, 5 }
  0x2f   :  { %v222_v50 = vsel %vm192_vm1, %v221_v40, %v220_v39  ;;  %v241_v53 = vrot.slane %v183_v31, 4  ;;  %v250_v54 = vrot.slane %v182_v30, 6  ;;  %v251_v55 = vrot.slane %v183_v31, 5 }
  0x30   :  { %v232_v58 = vsel %vm192_vm1, %v231_v47, %v230_v46  ;;  %v260_v59 = vrot.slane %v182_v30, 7  ;;  %v261_v60 = vrot.slane %v183_v31, 6  ;;  %v378_v33 = vperm.slane %v351_v23, 3 }
  0x32   :  { %339 = vmatpush.bf16.msra.mxu0 %v479_v14 }
  0x35   :  { %514 = vset.pattern.permute.xlu1 %v749_v7 }
  0x36   :  { %515 = vset.pattern.permute.xlu2 %v750_v8  ;;  %237 = vperm.xlu1 %514, %v154_v3  }
  0x37   :  { %247 = vperm.xlu2 %515, %v154_v3   ;;  %340 = vmatpush.bf16.msra.mxu0 %v478_v15 }
  0x39   :  { %186 = vperm.xlu0 %509, %v154_v3  }
  0x3b   :  { %341 = vmatpush.bf16.msra.mxu0 %v477_v16 }
  0x3e   :  { %516 = vset.pattern.permute.xlu1 %v751_v9 }
  0x3f   :  { %517 = vset.pattern.permute.xlu2 %v745_v1  ;;  %257 = vperm.xlu1 %516, %v154_v3   ;;  %v242_v1 = vsel %vm192_vm1, %v241_v53, %v240_v52  ;;  %v526_v53 = vld [vmem:[#allocation11] ss:$0 sm:$0xff] }
  0x40   :  { %354 = vperm.xlu2 %517, %v350_v12   ;;  %342 = vmatpush.bf16.msra.mxu0 %v476_v18 }
  0x41   :  { %522 = vset.pattern.permute.xlu0 %v749_v7  ;;  %v262_v7 = vsel %vm192_vm1, %v261_v60, %v260_v59  ;;  %v528_v59 = vld [vmem:[#allocation13] ss:$0 sm:$0xff]  ;;  %v529_v60 = vld [vmem:[#allocation14] ss:$0 sm:$0xff] }
  0x42   :  { %389 = vperm.xlu0 %522, %v350_v12  }
  0x44   :  { %343 = vmatpush.bf16.msra.mxu0 %v475_v22 }
  0x47   :  { %518 = vset.pattern.permute.xlu1 %v744_v0 }
  0x48   :  { %361 = vperm.xlu1 %518, %v350_v12   ;;  %519 = vset.pattern.permute.xlu2 %v747_v5 }
  0x49   :  { %368 = vperm.xlu2 %519, %v350_v12  }
  0x4a   :  { %525 = vset.pattern.permute.xlu0 %v751_v9 }
  0x50   :  { %520 = vset.pattern.permute.xlu1 %v746_v2  ;;  %v252_v2 = vsel %vm192_vm1, %v251_v55, %v250_v54  ;;  %v527_v55 = vld [vmem:[#allocation10] ss:$0 sm:$0xff] }
  0x51   :  { %375 = vperm.xlu1 %520, %v350_v12   ;;  %521 = vset.pattern.permute.xlu2 %v748_v6 }
  0x52   :  { %382 = vperm.xlu2 %521, %v350_v12  }
  0x59   :  { %523 = vset.pattern.permute.xlu1 %v750_v8 }
  0x5a   :  { %396 = vperm.xlu1 %523, %v350_v12   ;;  %524 = vset.pattern.permute.xlu2 %v751_v9 }
  0x5b   :  { %403 = vperm.xlu2 %524, %v350_v12  }
  0x7f   :  { %v218_v25 = vpop.permute.xlu2 %217 }
  0x80   :  { %v224_v61 = vmul.f32 %v222_v50, %v218_v25  ;;  %v364_v25 = vperm.slane %v351_v23, 1 }
  0x88   :  { %v228_v37 = vpop.permute.xlu2 %227 }
  0x89   :  { %v234_v5 = vmul.f32 %v232_v58, %v228_v37  ;;  %v385_v37 = vperm.slane %v351_v23, 4 }
  0x91   :  { %v248_v3 = vpop.permute.xlu2 %247 }
  0x92   :  { %v254_v11 = vmul.f32 %v252_v2, %v248_v3  ;;  %v430_v3 = vstv %s873_s10 }
  0x96   :  { %v199_v17 = vpop.permute.xlu1 %198 }
  0x97   :  { %v204_v49 = vmul.f32 %v202_v41, %v199_v17  ;;  %v392_v41 = vperm.slane %v351_v23, 5 }
  0x98   :  { %v839_v19 = vpop.xlane.xlu0 %157 }
  0x99   :  { %530 = vrcp.f32 %v839_v19  ;;  %v170_v0 = vand.u32 2147483648, %v839_v19  ;;  %vm164_vm3 = vweird.f32 %v839_v19  ;;  %v168_v6 = vand.u32 2147483647, %v839_v19 }
  0x9b   :  { %v171_v13 = vor.u32 1.1754944e-38, %v170_v0  ;;  %vm169_vm5 = vcmp.eq.f32.partialorder %v168_v6, 8.507059e+37 }
  0x9f   :  { %v208_v28 = vpop.permute.xlu1 %207  ;;  %v531_v29 = vpop.eup %530 }
  0xa0   :  { %v160_v32 = vmul.f32 %v531_v29, %v839_v19  ;;  %v214_v56 = vmul.f32 %v212_v44, %v208_v28  ;;  %vm165_vm2 = vweird.f32 %v531_v29  ;;  %v355_v19 = vpop.permute.xlu2 %354 }
  0xa1   :  { %vm166_vm4 = vmor %vm164_vm3, %vm165_vm2  ;;  %v358_v27 = vmul.f32 %v357_v24, %v355_v19 }
  0xa2   :  { %v161_v38 = vsub.f32 1.0, %v160_v32 }
  0xa4   :  { %v162_v48 = vmul.f32 %v531_v29, %v161_v38 }
  0xa6   :  { %v163_v63 = vadd.f32 %v531_v29, %v162_v48 }
  0xa8   :  { %v238_v43 = vpop.permute.xlu1 %237  ;;  %v167_v12 = vsel %vm166_vm4, %v531_v29, %v163_v63  ;;  %v371_v29 = vperm.slane %v351_v23, 2  ;;  %v369_v30 = vpop.permute.xlu2 %368 }
  0xa9   :  { %v244_v10 = vmul.f32 %v242_v1, %v238_v43  ;;  %v172_v16 = vsel %vm169_vm5, %v171_v13, %v167_v12 }
  0xaa   :  { %v173_v20 = vmul.f32 0.5, %v172_v16  ;;  %v372_v32 = vmul.f32 %v371_v29, %v369_v30 }
  0xab   :  { %v187_v45 = vpop.permute.xlu0 %186 }
  0xac   :  { %v195_v51 = vmul.f32 %v193_v42, %v187_v45  ;;  %v399_v45 = vperm.slane %v351_v23, 6 }
  0xae   :  { %v205_v57 = vadd.f32 %v204_v49, %v195_v51  ;;  %v406_v49 = vperm.slane %v351_v23, 7 }
  0xb0   :  { %v215_v62 = vadd.f32 %v214_v56, %v205_v57  ;;  %v383_v38 = vpop.permute.xlu2 %382 }
  0xb1   :  { %v258_v8 = vpop.permute.xlu1 %257  ;;  %v386_v40 = vmul.f32 %v385_v37, %v383_v38 }
  0xb2   :  { %v225_v4 = vadd.f32 %v224_v61, %v215_v62  ;;  %v264_v15 = vmul.f32 %v262_v7, %v258_v8 }
  0xb4   :  { %v235_v9 = vadd.f32 %v234_v5, %v225_v4  ;;  %v390_v42 = vpop.permute.xlu0 %389 }
  0xb5   :  { %v393_v44 = vmul.f32 %v392_v41, %v390_v42 }
  0xb6   :  { %v245_v14 = vadd.f32 %v244_v10, %v235_v9 }
  0xb8   :  { %v255_v17 = vadd.f32 %v254_v11, %v245_v14  ;;  %v404_v50 = vpop.permute.xlu2 %403 }
  0xb9   :  { %v407_v52 = vmul.f32 %v406_v49, %v404_v50 }
  0xba   :  { %v265_v18 = vadd.f32 %v264_v15, %v255_v17  ;;  %v362_v26 = vpop.permute.xlu1 %361 }
  0xbb   :  { %v365_v28 = vmul.f32 %v364_v25, %v362_v26 }
  0xbc   :  { %v266_v21 = vmul.f32 %v265_v18, %v173_v20 }
  0xbd   :  { %v366_v31 = vadd.f32 %v365_v28, %v358_v27 }
  0xbe   :  { %v283_v22 = vpack.c.bf16 %v266_v21, %v266_v21 }
  0xbf   :  { %v373_v35 = vadd.f32 %v372_v32, %v366_v31 }
  0xc0   :  { %344 = vmatmul.bf16.vlgmr.msra.gmra.mxu0 %v283_v22 }
  0xc3   :  { %v376_v34 = vpop.permute.xlu1 %375 }
  0xc4   :  { %v379_v36 = vmul.f32 %v378_v33, %v376_v34 }
  0xc6   :  { %v380_v39 = vadd.f32 %v379_v36, %v373_v35 }
  0xc8   :  { %v387_v43 = vadd.f32 %v386_v40, %v380_v39 }
  0xca   :  { %v394_v47 = vadd.f32 %v393_v44, %v387_v43 }
  0xcc   :  { %v397_v46 = vpop.permute.xlu1 %396 }
  0xcd   :  { %v400_v48 = vmul.f32 %v399_v45, %v397_v46 }
  0xcf   :  { %v401_v51 = vadd.f32 %v400_v48, %v394_v47 }
  0xd1   :  { %v408_v54 = vadd.f32 %v407_v52, %v401_v51 }
  0xd3   :  { %v413_v57 = vadd.f32 %v526_v53, %v408_v54 }
  0xd5   :  { %v423_v63 = vmul.f32 %v529_v60, %v413_v57 }
 0x13d   :  { %v345_v56 = vpop.f32.mrf.mxu0 }
 0x13e   :  { %v346_v58 = vadd.f32 %v527_v55, %v345_v56 }
 0x140   :  { %v349_v61 = vmax.f32 %v346_v58, 0.0 }
 0x142   :  { %v418_v62 = vmul.f32 %v528_v59, %v349_v61 }
 0x144   :  { %v424_v0 = vadd.f32 %v423_v63, %v418_v62 }
 0x145   :  { %v347_v1 = vpop.f32.mrf.mxu0 }
 0x146   :  { %v426_v2 = vsel %vm425_vm6, %v424_v0, 0.0 }
 0x147   :  { %427 = vadd.xlane.f32.xlu1 %v426_v2 }
 0x1ba   :  { %v428_v4 = vpop.xlane.xlu1 %427 }
 0x1bb   :  { %v431_v5 = vadd.f32 %v430_v3, %v428_v4 }
 0x1bd   :  { %433 = vst.msk [vmem:[%s874_s11] sm:$0x3] %vm432_vm7, %v431_v5 }
 0x1be   :  { %438 = vsyncpa [#allocation4], 1 }
 0x1bf   :  { %439 = vsyncpa [#allocation6], 1 }
 0x1c0   :  { %440 = vsyncpa [#allocation9], 1 }
 0x1c1   :  { %441 = vsyncpa [#allocation12], 1 }
 0x1c2   :  { %442 = vsyncpa [#allocation15], 1 }

</bundles_post_ra>
